<compile_context>
chip_gen: v7x
topology: tpu7x:2x2x1
jax: 0.10.0
libtpu: 0.0.40
codegen_flags: <defaults>
</compile_context>

<pallas_src>
import functools

import jax
import jax.numpy as jnp
from jax.experimental import pallas as pl
from jax.experimental.pallas import tpu as pltpu

REPARAM_NOISE = 1e-6


def actor_forward_kernel(x_ref, w1_ref, b1_ref, w2_ref, b2_ref,
                         wh_ref, bh_ref, mu_ref, sigma_ref, *, n_actions):
    # x: [Bt, D] f32; w*: bf16 [in, out]; b*: f32 [1, out];
    # mu/sigma: [Bt, A] f32.
    x = x_ref[...].astype(jnp.bfloat16)
    h1 = jnp.dot(x, w1_ref[...], preferred_element_type=jnp.float32)
    h1 = jnp.maximum(h1 + b1_ref[...], 0.0)                            # f32 relu
    h2 = jnp.dot(h1.astype(jnp.bfloat16), w2_ref[...],
                 preferred_element_type=jnp.float32)
    h2 = jnp.maximum(h2 + b2_ref[...], 0.0)                            # f32 relu
    heads = jnp.dot(h2.astype(jnp.bfloat16), wh_ref[...],
                    preferred_element_type=jnp.float32) + bh_ref[...]  # [Bt, 2A]
    mu_ref[...] = heads[:, :n_actions]
    sigma_ref[...] = jnp.clip(heads[:, n_actions:], REPARAM_NOISE, 1.0)
    # TODO(synk): sample_normal (Normal.rsample / tanh squash / log_prob) is
    # stochastic policy glue outside forward(); fusing it here (pltpu PRNG +
    # EUP tanh/exp) would change the forward() contract, so it is left out.


def actor_forward(state, packed, *, block_rows=128):
    """state: [B, D] f32. packed: dict with bf16 [in,out] weights, f32 [1,out]
    biases, heads pre-concatenated ([H2, 2A] / [1, 2A]). Returns (mu, sigma)."""
    B, D = state.shape
    H1 = packed["w1"].shape[1]
    H2 = packed["w2"].shape[1]
    two_a = packed["wh"].shape[1]
    A = two_a // 2

    # Pad the batch to a whole number of blocks (block_rows is sublane-aligned).
    bpad = pl.cdiv(B, block_rows) * block_rows
    state_in = state if bpad == B else jnp.pad(state, ((0, bpad - B), (0, 0)))
    num_blocks = bpad // block_rows

    flops = 2 * bpad * (D * H1 + H1 * H2 + H2 * two_a)
    bytes_accessed = (state_in.size * 4
                      + (packed["w1"].size + packed["w2"].size + packed["wh"].size) * 2
                      + (packed["b1"].size + packed["b2"].size + packed["bh"].size) * 4
                      + 2 * bpad * A * 4)

    # Weights/biases: constant block index -> fetched once, VMEM-resident.
    def pinned(arr):
        return pl.BlockSpec(arr.shape, lambda s: (0, 0))

    in_specs = [
        pl.BlockSpec((block_rows, D), lambda s: (s, 0)),   # state: streamed
        pinned(packed["w1"]), pinned(packed["b1"]),
        pinned(packed["w2"]), pinned(packed["b2"]),
        pinned(packed["wh"]), pinned(packed["bh"]),
    ]
    out_specs = (
        pl.BlockSpec((block_rows, A), lambda s: (s, 0)),   # mu
        pl.BlockSpec((block_rows, A), lambda s: (s, 0)),   # sigma
    )
    # Independent batch blocks; only shard across TensorCores (v7x) when the
    # total work is big enough that the per-step overhead is amortized.
    sem = "parallel" if bpad >= 1024 else "arbitrary"

    mu, sigma = pl.pallas_call(
        functools.partial(actor_forward_kernel, n_actions=A),
        grid=(num_blocks,),
        out_shape=(jax.ShapeDtypeStruct((bpad, A), jnp.float32),
                   jax.ShapeDtypeStruct((bpad, A), jnp.float32)),
        in_specs=in_specs,
        out_specs=out_specs,
        compiler_params=pltpu.CompilerParams(dimension_semantics=(sem,)),
        cost_estimate=pl.CostEstimate(flops=flops, transcendentals=0,
                                      bytes_accessed=bytes_accessed),
    )(state_in, packed["w1"], packed["b1"], packed["w2"], packed["b2"],
      packed["wh"], packed["bh"])

    if bpad != B:
        mu, sigma = mu[:B], sigma[:B]
    return mu, sigma


def init_params(key, input_dim, h1, h2, n_actions):
    """nn.Linear-style init: U(-1/sqrt(fan_in), 1/sqrt(fan_in)); weights stored
    [in, out] (transpose of PyTorch's [out, in])."""
    ks = jax.random.split(key, 8)

    def lin(kw, kb, fan_in, fan_out):
        bound = 1.0 / float(jnp.sqrt(jnp.float32(fan_in)))
        w = jax.random.uniform(kw, (fan_in, fan_out), jnp.float32, -bound, bound)
        b = jax.random.uniform(kb, (1, fan_out), jnp.float32, -bound, bound)
        return w, b

    w1, b1 = lin(ks[0], ks[1], input_dim, h1)
    w2, b2 = lin(ks[2], ks[3], h1, h2)
    wmu, bmu = lin(ks[4], ks[5], h2, n_actions)
    wsg, bsg = lin(ks[6], ks[7], h2, n_actions)
    return dict(w1=w1, b1=b1, w2=w2, b2=b2, wmu=wmu, bmu=bmu, wsg=wsg, bsg=bsg)


def pack_params(p):
    """bf16 weights for the MXU, f32 biases; both heads concatenated."""
    return dict(
        w1=p["w1"].astype(jnp.bfloat16), b1=p["b1"],
        w2=p["w2"].astype(jnp.bfloat16), b2=p["b2"],
        wh=jnp.concatenate([p["wmu"], p["wsg"]], axis=1).astype(jnp.bfloat16),
        bh=jnp.concatenate([p["bmu"], p["bsg"]], axis=1),
    )


def actor_forward_ref_f32(state, p):
    """Pure-f32 JAX reference of the PyTorch forward."""
    h1 = jax.nn.relu(state @ p["w1"] + p["b1"])
    h2 = jax.nn.relu(h1 @ p["w2"] + p["b2"])
    mu = h2 @ p["wmu"] + p["bmu"]
    sigma = jnp.clip(h2 @ p["wsg"] + p["bsg"], REPARAM_NOISE, 1.0)
    return mu, sigma


def actor_forward_ref_bf16(state, packed):
    """Pure-JAX reference at the same mixed precision as the kernel."""
    def mm(a, w):
        return jnp.dot(a.astype(jnp.bfloat16), w,
                       preferred_element_type=jnp.float32)
    h1 = jax.nn.relu(mm(state, packed["w1"]) + packed["b1"])
    h2 = jax.nn.relu(mm(h1, packed["w2"]) + packed["b2"])
    heads = mm(h2, packed["wh"]) + packed["bh"]
    A = packed["wh"].shape[1] // 2
    return heads[:, :A], jnp.clip(heads[:, A:], REPARAM_NOISE, 1.0)


if __name__ == "__main__":
    # input_dims=(8,), hidden=256/256, n_actions=2 (module defaults).
    # 256 stacked env-step rows -> grid of two 128-row blocks, demonstrating
    # the streaming pipeline with weights pinned in VMEM.
    B, D, H1, H2, A = 256, 8, 256, 256, 2

    key = jax.random.PRNGKey(0)
    k_params, k_state = jax.random.split(key)
    params = init_params(k_params, D, H1, H2, A)
    packed = pack_params(params)
    state = jax.random.normal(k_state, (B, D), dtype=jnp.float32)

    mu, sigma = actor_forward(state, packed, block_rows=128)
    jax.block_until_ready((mu, sigma))

    # Tight check against a pure-JAX reference at the same mixed precision.
    mu_q, sigma_q = actor_forward_ref_bf16(state, packed)
    assert jnp.allclose(mu, mu_q, atol=2e-4, rtol=1e-3)
    assert jnp.allclose(sigma, sigma_q, atol=2e-4, rtol=1e-3)

    # Looser sanity check against the full-f32 PyTorch-equivalent forward
    # (bf16 weight quantization drifts slightly from the f32 module).
    mu32, sigma32 = actor_forward_ref_f32(state, params)
    assert jnp.allclose(mu, mu32, atol=5e-2, rtol=5e-2)
    assert jnp.allclose(sigma, sigma32, atol=5e-2, rtol=5e-2)

    assert mu.shape == (B, A) and sigma.shape == (B, A)
    # Clamp floor is float32(1e-6) (~9.9999997e-07), slightly below the python
    # double 1e-6 — compare against the f32 value.
    clamp_lo = float(jnp.float32(REPARAM_NOISE))
    assert float(sigma.min()) >= clamp_lo and float(sigma.max()) <= 1.0

    print("KERNEL_OK")
</pallas_src>

<mosaic_0001>
module attributes {stable_mosaic.version = 11 : i64} {
  func.func @actor_forward_kernel(%arg0: i32, %arg1: memref<128x8xf32, #tpu.memory_space<vmem>>, %arg2: memref<8x256xbf16, #tpu.memory_space<vmem>>, %arg3: memref<1x256xf32, #tpu.memory_space<vmem>>, %arg4: memref<256x256xbf16, #tpu.memory_space<vmem>>, %arg5: memref<1x256xf32, #tpu.memory_space<vmem>>, %arg6: memref<256x4xbf16, #tpu.memory_space<vmem>>, %arg7: memref<1x4xf32, #tpu.memory_space<vmem>>, %arg8: memref<128x2xf32, #tpu.memory_space<vmem>>, %arg9: memref<128x2xf32, #tpu.memory_space<vmem>>) attributes {dimension_semantics = [#tpu.dimension_semantics<arbitrary>], iteration_bounds = array<i64: 2>, scalar_prefetch = 0 : i64, scratch_operands = 0 : i64, tpu.core_type = #tpu.core_type<tc>, window_params = [{transform_indices = @transform_0, window_bounds = array<i64: 128, 8>}, {pipeline_mode = #tpu.pipeline_mode<synchronous>, transform_indices = @transform_1, window_bounds = array<i64: 8, 256>}, {pipeline_mode = #tpu.pipeline_mode<synchronous>, transform_indices = @transform_2, window_bounds = array<i64: 1, 256>}, {pipeline_mode = #tpu.pipeline_mode<synchronous>, transform_indices = @transform_3, window_bounds = array<i64: 256, 256>}, {pipeline_mode = #tpu.pipeline_mode<synchronous>, transform_indices = @transform_4, window_bounds = array<i64: 1, 256>}, {pipeline_mode = #tpu.pipeline_mode<synchronous>, transform_indices = @transform_5, window_bounds = array<i64: 256, 4>}, {pipeline_mode = #tpu.pipeline_mode<synchronous>, transform_indices = @transform_6, window_bounds = array<i64: 1, 4>}, {transform_indices = @transform_7, window_bounds = array<i64: 128, 2>}, {transform_indices = @transform_8, window_bounds = array<i64: 128, 2>}]} {
    %c0 = arith.constant 0 : index
    %c0_0 = arith.constant 0 : index
    %0 = vector.load %arg1[%c0, %c0_0] : memref<128x8xf32, #tpu.memory_space<vmem>>, vector<128x8xf32>
    %1 = arith.truncf %0 : vector<128x8xf32> to vector<128x8xbf16>
    %c0_1 = arith.constant 0 : index
    %c0_2 = arith.constant 0 : index
    %2 = vector.load %arg2[%c0_1, %c0_2] : memref<8x256xbf16, #tpu.memory_space<vmem>>, vector<8x256xbf16>
    %cst = arith.constant dense<0.000000e+00> : vector<128x256xf32>
    %3 = tpu.matmul %1, %2, %cst {dimension_numbers = #tpu.dot_dimension_numbers<[1], [0], [0], [1], [0, 0, 1, 1], [], []>} : vector<128x8xbf16>, vector<8x256xbf16>, vector<128x256xf32> -> vector<128x256xf32>
    %c0_3 = arith.constant 0 : index
    %c0_4 = arith.constant 0 : index
    %4 = vector.load %arg3[%c0_3, %c0_4] : memref<1x256xf32, #tpu.memory_space<vmem>>, vector<1x256xf32>
    %5 = vector.broadcast %4 : vector<1x256xf32> to vector<128x256xf32>
    %6 = arith.addf %3, %5 : vector<128x256xf32>
    %cst_5 = arith.constant 0.000000e+00 : f32
    %7 = vector.broadcast %cst_5 : f32 to vector<128x256xf32>
    %8 = arith.maximumf %6, %7 : vector<128x256xf32>
    %9 = arith.truncf %8 : vector<128x256xf32> to vector<128x256xbf16>
    %c0_6 = arith.constant 0 : index
    %c0_7 = arith.constant 0 : index
    %10 = vector.load %arg4[%c0_6, %c0_7] : memref<256x256xbf16, #tpu.memory_space<vmem>>, vector<256x256xbf16>
    %cst_8 = arith.constant dense<0.000000e+00> : vector<128x256xf32>
    %11 = tpu.matmul %9, %10, %cst_8 {dimension_numbers = #tpu.dot_dimension_numbers<[1], [0], [0], [1], [0, 0, 1, 1], [], []>} : vector<128x256xbf16>, vector<256x256xbf16>, vector<128x256xf32> -> vector<128x256xf32>
    %c0_9 = arith.constant 0 : index
    %c0_10 = arith.constant 0 : index
    %12 = vector.load %arg5[%c0_9, %c0_10] : memref<1x256xf32, #tpu.memory_space<vmem>>, vector<1x256xf32>
    %13 = vector.broadcast %12 : vector<1x256xf32> to vector<128x256xf32>
    %14 = arith.addf %11, %13 : vector<128x256xf32>
    %cst_11 = arith.constant 0.000000e+00 : f32
    %15 = vector.broadcast %cst_11 : f32 to vector<128x256xf32>
    %16 = arith.maximumf %14, %15 : vector<128x256xf32>
    %17 = arith.truncf %16 : vector<128x256xf32> to vector<128x256xbf16>
    %c0_12 = arith.constant 0 : index
    %c0_13 = arith.constant 0 : index
    %18 = vector.load %arg6[%c0_12, %c0_13] : memref<256x4xbf16, #tpu.memory_space<vmem>>, vector<256x4xbf16>
    %cst_14 = arith.constant dense<0.000000e+00> : vector<128x4xf32>
    %19 = tpu.matmul %17, %18, %cst_14 {dimension_numbers = #tpu.dot_dimension_numbers<[1], [0], [0], [1], [0, 0, 1, 1], [], []>} : vector<128x256xbf16>, vector<256x4xbf16>, vector<128x4xf32> -> vector<128x4xf32>
    %c0_15 = arith.constant 0 : index
    %c0_16 = arith.constant 0 : index
    %20 = vector.load %arg7[%c0_15, %c0_16] : memref<1x4xf32, #tpu.memory_space<vmem>>, vector<1x4xf32>
    %21 = vector.broadcast %20 : vector<1x4xf32> to vector<128x4xf32>
    %22 = arith.addf %19, %21 : vector<128x4xf32>
    %23 = vector.extract_strided_slice %22 {offsets = [0, 0], sizes = [128, 2], strides = [1, 1]} : vector<128x4xf32> to vector<128x2xf32>
    %c0_17 = arith.constant 0 : index
    %c0_18 = arith.constant 0 : index
    %24 = vector.load %arg8[%c0_17, %c0_18] : memref<128x2xf32, #tpu.memory_space<vmem>>, vector<128x2xf32>
    tpu.vector_store %arg8[%c0_17, %c0_18], %23 {strides = array<i32>} : memref<128x2xf32, #tpu.memory_space<vmem>>, vector<128x2xf32>,
    %25 = vector.extract_strided_slice %22 {offsets = [0, 2], sizes = [128, 2], strides = [1, 1]} : vector<128x4xf32> to vector<128x2xf32>
    %cst_19 = arith.constant 9.99999997E-7 : f32
    %cst_20 = arith.constant 1.000000e+00 : f32
    %26 = vector.broadcast %cst_19 : f32 to vector<128x2xf32>
    %27 = arith.maximumf %26, %25 : vector<128x2xf32>
    %28 = vector.broadcast %cst_20 : f32 to vector<128x2xf32>
    %29 = arith.minimumf %28, %27 : vector<128x2xf32>
    %c0_21 = arith.constant 0 : index
    %c0_22 = arith.constant 0 : index
    %30 = vector.load %arg9[%c0_21, %c0_22] : memref<128x2xf32, #tpu.memory_space<vmem>>, vector<128x2xf32>
    tpu.vector_store %arg9[%c0_21, %c0_22], %29 {strides = array<i32>} : memref<128x2xf32, #tpu.memory_space<vmem>>, vector<128x2xf32>,
    return
  }
  func.func @transform_0(%arg0: i32) -> (i32, i32) {
    %c0_i32 = arith.constant 0 : i32
    %c0_i32_0 = arith.constant 0 : i32
    return %arg0, %c0_i32 : i32, i32
  }
  func.func @transform_1(%arg0: i32) -> (i32, i32) {
    %c0_i32 = arith.constant 0 : i32
    %c0_i32_0 = arith.constant 0 : i32
    %c0_i32_1 = arith.constant 0 : i32
    return %c0_i32, %c0_i32_0 : i32, i32
  }
  func.func @transform_2(%arg0: i32) -> (i32, i32) {
    %c0_i32 = arith.constant 0 : i32
    %c0_i32_0 = arith.constant 0 : i32
    %c0_i32_1 = arith.constant 0 : i32
    return %c0_i32, %c0_i32_0 : i32, i32
  }
  func.func @transform_3(%arg0: i32) -> (i32, i32) {
    %c0_i32 = arith.constant 0 : i32
    %c0_i32_0 = arith.constant 0 : i32
    %c0_i32_1 = arith.constant 0 : i32
    return %c0_i32, %c0_i32_0 : i32, i32
  }
  func.func @transform_4(%arg0: i32) -> (i32, i32) {
    %c0_i32 = arith.constant 0 : i32
    %c0_i32_0 = arith.constant 0 : i32
    %c0_i32_1 = arith.constant 0 : i32
    return %c0_i32, %c0_i32_0 : i32, i32
  }
  func.func @transform_5(%arg0: i32) -> (i32, i32) {
    %c0_i32 = arith.constant 0 : i32
    %c0_i32_0 = arith.constant 0 : i32
    %c0_i32_1 = arith.constant 0 : i32
    return %c0_i32, %c0_i32_0 : i32, i32
  }
  func.func @transform_6(%arg0: i32) -> (i32, i32) {
    %c0_i32 = arith.constant 0 : i32
    %c0_i32_0 = arith.constant 0 : i32
    %c0_i32_1 = arith.constant 0 : i32
    return %c0_i32, %c0_i32_0 : i32, i32
  }
  func.func @transform_7(%arg0: i32) -> (i32, i32) {
    %c0_i32 = arith.constant 0 : i32
    %c0_i32_0 = arith.constant 0 : i32
    return %arg0, %c0_i32 : i32, i32
  }
  func.func @transform_8(%arg0: i32) -> (i32, i32) {
    %c0_i32 = arith.constant 0 : i32
    %c0_i32_0 = arith.constant 0 : i32
    return %arg0, %c0_i32 : i32, i32
  }
}

</mosaic_0001>

<bundles_post_ra>
// kernel: tpu_custom_call.1
= control target key start
LH: loop header
LB: loop body
LE: loop exit
PB: predicated region body
PF: predicated region fallthrough
CT: control target
= control target key end

     0   :  { %s1643_s27 = smov 0   ;;  %s2044_s0 = inlined_call_operand.vmem [shape: f32[256,8], index: 0, kind: input, shape index: {}]   ;;  %s2045_s1 = inlined_call_operand.vmem [shape: bf16[8,256], index: 1, kind: input, shape index: {}]   ;;  %s2046_s2 = inlined_call_operand.vmem [shape: f32[1,256], index: 2, kind: input, shape index: {}]   ;;  %s2047_s3 = inlined_call_operand.vmem [shape: bf16[256,256], index: 3, kind: input, shape index: {}]   ;;  %s2048_s4 = inlined_call_operand.vmem [shape: f32[1,256], index: 4, kind: input, shape index: {}]   ;;  %s2049_s5 = inlined_call_operand.vmem [shape: bf16[256,4], index: 5, kind: input, shape index: {}]   ;;  %s2050_s6 = inlined_call_operand.vmem [shape: f32[1,4], index: 6, kind: input, shape index: {}]   ;;  %s2051_s7 = inlined_call_operand.vmem [shape: f32[256,2], index: 7, kind: output, shape index: {0}]   ;;  %s2052_s8 = inlined_call_operand.vmem [shape: f32[256,2], index: 8, kind: output, shape index: {1}]  }
   0x1 LB: > { %s1375_s28 = sadd.s32 4294967295, %s1594_s27   ;;  %p1379_p0 = scmp.ge.s32.totalorder %s1594_s27, 1  ;;  %s1594_s27 = sphi %s1643_s27, %s19_s27  }
   0x2   : > { %p266_p1 = scmp.lt.s32.totalorder %s1594_s27, 3 }
   0x4   : > { %p267_p2 = pnand %p1379_p0, %p266_p1 }
   0x5   : > { %v348_v0 = vld [vmem:[%s2045_s1] sm:$0xff] (!%p267_p2)  ;;  %vm391_vm0 = vcmask (!%p267_p2), 1043456   ;;  %s1380_s9 = sshll.u32 (!%p267_p2), %s1375_s28, 4  ;;  %v1596_v3 = vmov (!%p267_p2), 0   ;;  %v1527_v6 = vld [vmem:[%s2047_s3 + $0x14] ss:$8 sps:$4 sm:$0xff] (!%p267_p2)  }
   0x6   : > { %270 = sbr.rel (%p267_p2) target bundleno = 858 (0x35a), region = 48  ;;  %v1387_v1 = vcombine.high (!%p267_p2), %v348_v0, %v348_v0  ;;  %v1386_v2 = vcombine.low (!%p267_p2), %v348_v0, %v348_v0  ;;  %430 = vmatprep.mubr.bf16.mxu0 (!%p267_p2), %v1596_v3  ;;  %p306_p3 = scmp.lt.s32.totalorder (!%p267_p2), %s1380_s9, 31  ;;  %v1524_v4 = vld [vmem:[%s2047_s3 + $0x4] ss:$8 sps:$4 sm:$0xff] (!%p267_p2)   ;;  %v1526_v5 = vld [vmem:[%s2047_s3] ss:$8 sps:$4 sm:$0xff] (!%p267_p2)  }
   0x7   : > { %763 = vmatprep.subr.bf16.mxu1 (!%p267_p2), %v1524_v4  ;;  %v1529_v8 = vld [vmem:[%s2047_s3 + $0x10] ss:$8 sps:$4 sm:$0xff] (!%p267_p2)   ;;  %v1530_v9 = vld [vmem:[%s2047_s3 + $0x24] ss:$8 sps:$4 sm:$0xff] (!%p267_p2)   ;;  %vm366_vm1 = vcmask (!%p267_p2), 64512   ;;  %vm1156_vm2 = vcmask (!%p267_p2), 15360  }
   0x8   : > { %1388 = vmatprep.subr.msk.bf16.mxu0 (!%p267_p2), %vm391_vm0, %v1387_v1  ;;  %v393_v7 = vsel (!%p267_p2), %vm391_vm0, %v1386_v2, 0  ;;  %764 = vmatpush1.bf16.msra.mxu1 (!%p267_p2), %v1526_v5  ;;  %v1532_v13 = vld [vmem:[%s2047_s3 + $0x20] ss:$8 sps:$4 sm:$0xff] (!%p267_p2)   ;;  %v1533_v14 = vld [vmem:[%s2047_s3 + $0x34] ss:$8 sps:$4 sm:$0xff] (!%p267_p2)   ;;  %s1597_s20 = smov (!%p267_p2), 126  }
   0x9   : > { %399 = vmatpush1.bf16.msra.mxu0 (!%p267_p2), %v393_v7  ;;  %765 = vmatprep.subr.bf16.mxu1 (!%p267_p2), %v1527_v6  ;;  %v1535_v17 = vld [vmem:[%s2047_s3 + $0x30] ss:$8 sps:$4 sm:$0xff] (!%p267_p2)   ;;  %v1536_v18 = vld [vmem:[%s2047_s3 + $0x44] ss:$8 sps:$4 sm:$0xff] (!%p267_p2)   ;;  %v1538_v20 = vld [vmem:[%s2047_s3 + $0x40] ss:$8 sps:$4 sm:$0xff] (!%p267_p2)  }
   0xa   : > { %v1539_v21 = vld [vmem:[%s2047_s3 + $0x54] ss:$8 sps:$4 sm:$0xff] (!%p267_p2)   ;;  %v1541_v24 = vld [vmem:[%s2047_s3 + $0x50] ss:$8 sps:$4 sm:$0xff] (!%p267_p2)   ;;  %v1542_v25 = vld [vmem:[%s2047_s3 + $0x64] ss:$8 sps:$4 sm:$0xff] (!%p267_p2)  }
   0xb   : > { %v1544_v27 = vld [vmem:[%s2047_s3 + $0x60] ss:$8 sps:$4 sm:$0xff] (!%p267_p2)   ;;  %v1545_v28 = vld [vmem:[%s2047_s3 + $0x74] ss:$8 sps:$4 sm:$0xff] (!%p267_p2)   ;;  %v1547_v31 = vld [vmem:[%s2047_s3 + $0x70] ss:$8 sps:$4 sm:$0xff] (!%p267_p2)  }
   0xc   : > { %766 = vmatpush1.bf16.msra.mxu1 (!%p267_p2), %v1529_v8  ;;  %v1548_v32 = vld [vmem:[%s2047_s3 + $0x84] ss:$8 sps:$4 sm:$0xff] (!%p267_p2)   ;;  %v1550_v34 = vld [vmem:[%s2047_s3 + $0x80] ss:$8 sps:$4 sm:$0xff] (!%p267_p2)   ;;  %v1551_v35 = vld [vmem:[%s2047_s3 + $0x94] ss:$8 sps:$4 sm:$0xff] (!%p267_p2)  }
   0xd   : > { %s2054_s9 = smov (!%p306_p3, %s1380_s9), 31  ;;  %767 = vmatprep.subr.bf16.mxu1 %v1530_v9  ;;  %v1553_v38 = vld [vmem:[%s2047_s3 + $0x90] ss:$8 sps:$4 sm:$0xff]   ;;  %v1554_v39 = vld [vmem:[%s2047_s3 + $0xa4] ss:$8 sps:$4 sm:$0xff]  }
   0xe   : > { %s1667_s18 = sshll.u32 %s2054_s9, 3  ;;  %v1556_v41 = vld [vmem:[%s2047_s3 + $0xa0] ss:$8 sps:$4 sm:$0xff]   ;;  %v1557_v42 = vld [vmem:[%s2047_s3 + $0xb4] ss:$8 sps:$4 sm:$0xff]  }
   0xf   : > { %s1676_s23 = scalar_lea.vmem %s2044_s0, %s1667_s18  ;;  %v1559_v45 = vld [vmem:[%s2047_s3 + $0xb0] ss:$8 sps:$4 sm:$0xff]   ;;  %v1560_v46 = vld [vmem:[%s2047_s3 + $0xc4] ss:$8 sps:$4 sm:$0xff]   ;;  %v1562_v48 = vld [vmem:[%s2047_s3 + $0xc0] ss:$8 sps:$4 sm:$0xff]   ;;  %s1937_s19 = scalar_lea.vmem %s2051_s7, %s1667_s18 }
  0x10   : > { %v324_v10 = vld [vmem:[%s1676_s23] sm:$0xff]  ;;  %v325_v11 = vld [vmem:[%s1676_s23 + $0x8] sm:$0xff]  ;;  %v326_v15 = vld [vmem:[%s1676_s23 + $0x10] sm:$0xff]  ;;  %768 = vmatpush1.bf16.msra.mxu1 %v1532_v13  ;;  %s2007_s24 = scalar_lea.vmem %s2052_s8, %s1667_s18 }
  0x11   : > { %v340_v12 = vpack.c.bf16 %v325_v11, %v324_v10  ;;  %v327_v16 = vld [vmem:[%s1676_s23 + $0x18] sm:$0xff]  ;;  %769 = vmatprep.subr.bf16.mxu1 %v1533_v14  ;;  %v328_v22 = vld [vmem:[%s1676_s23 + $0x20] sm:$0xff]  ;;  %v329_v23 = vld [vmem:[%s1676_s23 + $0x28] sm:$0xff]  ;;  %v351_v11 = vlaneseq }
  0x12   : > { %v341_v19 = vpack.c.bf16 %v327_v16, %v326_v15  ;;  %v342_v26 = vpack.c.bf16 %v329_v23, %v328_v22  ;;  %v330_v29 = vld [vmem:[%s1676_s23 + $0x30] sm:$0xff]  ;;  %v331_v30 = vld [vmem:[%s1676_s23 + $0x38] sm:$0xff]  ;;  %v332_v36 = vld [vmem:[%s1676_s23 + $0x40] sm:$0xff] }
  0x13   : > { %1389 = vmatmul.mubr.msk.bf16.vlgmr.msra.gmra.mrb[0].mxu0 %vm366_vm1, %v340_v12  ;;  %v343_v33 = vpack.c.bf16 %v331_v30, %v330_v29  ;;  %v333_v37 = vld [vmem:[%s1676_s23 + $0x48] sm:$0xff]  ;;  %v334_v43 = vld [vmem:[%s1676_s23 + $0x50] sm:$0xff]  ;;  %v335_v44 = vld [vmem:[%s1676_s23 + $0x58] sm:$0xff]  ;;  %v1832_v12 = vshrl.u32 %v351_v11, 7 }
  0x14   : > { %440 = vmatprep.mubr.bf16.mxu0 %v1596_v3  ;;  %770 = vmatpush1.bf16.msra.mxu1 %v1535_v17  ;;  %v344_v40 = vpack.c.bf16 %v333_v37, %v332_v36  ;;  %v345_v47 = vpack.c.bf16 %v335_v44, %v334_v43  ;;  %v1563_v49 = vld [vmem:[%s2047_s3 + $0xd4] ss:$8 sps:$4 sm:$0xff]   ;;  %v336_v50 = vld [vmem:[%s1676_s23 + $0x60] sm:$0xff]  ;;  %v337_v51 = vld [vmem:[%s1676_s23 + $0x68] sm:$0xff] }
  0x15   : > { %771 = vmatprep.subr.bf16.mxu1 %v1536_v18  ;;  %v346_v52 = vpack.c.bf16 %v337_v51, %v336_v50  ;;  %v338_v53 = vld [vmem:[%s1676_s23 + $0x70] sm:$0xff]  ;;  %v339_v54 = vld [vmem:[%s1676_s23 + $0x78] sm:$0xff]  ;;  %v1566_v57 = vld [vmem:[%s2047_s3 + $0xe4] ss:$8 sps:$4 sm:$0xff]   ;;  %v353_v13 = vsub.s32 0, %v1832_v12  ;;  %v357_v15 = vsub.s32 1, %v1832_v12 }
  0x16   : > { %v347_v55 = vpack.c.bf16 %v339_v54, %v338_v53  ;;  %v1565_v56 = vld [vmem:[%s2047_s3 + $0xd0] ss:$8 sps:$4 sm:$0xff]   ;;  %v1568_v58 = vld [vmem:[%s2047_s3 + $0xe0] ss:$8 sps:$4 sm:$0xff]   ;;  %v1569_v59 = vld [vmem:[%s2047_s3 + $0xf4] ss:$8 sps:$4 sm:$0xff]  }
  0x17   : > { %v1571_v60 = vld [vmem:[%s2047_s3 + $0xf0] ss:$8 sps:$4 sm:$0xff]   ;;  %v1572_v61 = vld [vmem:[%s2049_s5 + $0x40] sm:$0xff]   ;;  %v1574_v63 = vld [vmem:[%s2049_s5 + $0x48] sm:$0xff]  }
  0x18   : > { %772 = vmatpush1.bf16.msra.mxu1 %v1538_v20  ;;  %v1573_v62 = vld [vmem:[%s2049_s5] sm:$0xff]   ;;  %1448 = vmatprep.subr.bf16.mxu0 %v1572_v61  ;;  %v1575_v0 = vld [vmem:[%s2049_s5 + $0x8] sm:$0xff]   ;;  %v1576_v1 = vld [vmem:[%s2049_s5 + $0x50] sm:$0xff]  }
  0x19   : > { %773 = vmatprep.subr.bf16.mxu1 %v1539_v21  ;;  %1449 = vmatpush3.bf16.msra.mxu0 %v1573_v62  ;;  %v1577_v2 = vld [vmem:[%s2049_s5 + $0x10] sm:$0xff]   ;;  %v1579_v4 = vld [vmem:[%s2049_s5 + $0x18] sm:$0xff]   ;;  %v1580_v5 = vld [vmem:[%s2049_s5 + $0x60] sm:$0xff]  }
  0x1a   : > { %1450 = vmatprep.subr.bf16.mxu0 %v1574_v63  ;;  %v1581_v6 = vld [vmem:[%s2049_s5 + $0x20] sm:$0xff]   ;;  %v1582_v7 = vld [vmem:[%s2049_s5 + $0x68] sm:$0xff]   ;;  %v1584_v9 = vld [vmem:[%s2049_s5 + $0x70] sm:$0xff]  }
  0x1b   : > { %1390 = vmatmul.mubr.msk.bf16.gmra.mrb[4].mxu0 %vm366_vm1, %v341_v19  ;;  %v1583_v8 = vld [vmem:[%s2049_s5 + $0x28] sm:$0xff]   ;;  %v1585_v10 = vld [vmem:[%s2049_s5 + $0x30] sm:$0xff]   ;;  %v349_v14 = vld [vmem:[%s2046_s2] sm:$0x3] }
  0x1c   : > { %450 = vmatprep.mubr.bf16.mxu0 %v1596_v3  ;;  %774 = vmatpush1.bf16.msra.mxu1 %v1541_v24  ;;  %v1841_v16 = vrot.slane %v349_v14, %v353_v13  ;;  %v1845_v17 = vrot.slane %v349_v14, %v357_v15 }
  0x1d   : > { %775 = vmatprep.subr.bf16.mxu1 %v1542_v25  ;;  %1451 = vmatpush3.bf16.msra.mxu0 %v1575_v0 }
  0x1e   : > { %1452 = vmatprep.subr.bf16.mxu0 %v1576_v1 }
  0x20   : > { %776 = vmatpush1.bf16.msra.mxu1 %v1544_v27 }
  0x21   : > { %777 = vmatprep.subr.bf16.mxu1 %v1545_v28  ;;  %1453 = vmatpush3.bf16.msra.mxu0 %v1577_v2 }
  0x23   : > { %1391 = vmatmul.mubr.msk.bf16.gmra.mrb[8].mxu0 %vm366_vm1, %v342_v26 }
  0x24   : > { %460 = vmatprep.mubr.bf16.mxu0 %v1596_v3  ;;  %778 = vmatpush1.bf16.msra.mxu1 %v1547_v31 }
  0x25   : > { %779 = vmatprep.subr.bf16.mxu1 %v1548_v32 }
  0x28   : > { %780 = vmatpush1.bf16.msra.mxu1 %v1550_v34 }
  0x29   : > { %781 = vmatprep.subr.bf16.mxu1 %v1551_v35 }
  0x2b   : > { %1392 = vmatmul.mubr.msk.bf16.gmra.mrb[12].mxu0 %vm366_vm1, %v343_v33 }
  0x2c   : > { %470 = vmatprep.mubr.bf16.mxu0 %v1596_v3  ;;  %782 = vmatpush1.bf16.msra.mxu1 %v1553_v38 }
  0x2d   : > { %783 = vmatprep.subr.bf16.mxu1 %v1554_v39 }
  0x30   : > { %784 = vmatpush1.bf16.msra.mxu1 %v1556_v41 }
  0x31   : > { %785 = vmatprep.subr.bf16.mxu1 %v1557_v42 }
  0x33   : > { %1393 = vmatmul.mubr.msk.bf16.gmra.mrb[16].mxu0 %vm366_vm1, %v344_v40 }
  0x34   : > { %480 = vmatprep.mubr.bf16.mxu0 %v1596_v3  ;;  %786 = vmatpush1.bf16.msra.mxu1 %v1559_v45 }
  0x35   : > { %787 = vmatprep.subr.bf16.mxu1 %v1560_v46 }
  0x38   : > { %788 = vmatpush1.bf16.msra.mxu1 %v1562_v48 }
  0x39   : > { %789 = vmatprep.subr.bf16.mxu1 %v1563_v49 }
  0x3b   : > { %1394 = vmatmul.mubr.msk.bf16.gmra.mrb[20].mxu0 %vm366_vm1, %v345_v47 }
  0x3c   : > { %490 = vmatprep.mubr.bf16.mxu0 %v1596_v3  ;;  %790 = vmatpush1.bf16.msra.mxu1 %v1565_v56 }
  0x3d   : > { %791 = vmatprep.subr.bf16.mxu1 %v1566_v57 }
  0x40   : > { %792 = vmatpush1.bf16.msra.mxu1 %v1568_v58 }
  0x41   : > { %793 = vmatprep.subr.bf16.mxu1 %v1569_v59 }
  0x43   : > { %1395 = vmatmul.mubr.msk.bf16.gmra.mrb[24].mxu0 %vm366_vm1, %v346_v52 }
  0x44   : > { %500 = vmatprep.mubr.bf16.mxu0 %v1596_v3  ;;  %794 = vmatpush1.bf16.msra.mxu1 %v1571_v60  ;;  %v1578_v3 = vld [vmem:[%s2049_s5 + $0x58] sm:$0xff]  }
  0x45   : > { %1454 = vmatprep.subr.bf16.mxu0 %v1578_v3 }
  0x46   : > { %1455 = vmatpush3.bf16.msra.mxu0 %v1579_v4 }
  0x47   : > { %1456 = vmatprep.subr.bf16.mxu0 %v1580_v5 }
  0x4a   : > { %1457 = vmatpush3.bf16.msra.mxu0 %v1581_v6 }
  0x4b   : > { %1396 = vmatmul.mubr.msk.bf16.gmra.mrb[28].mxu0 %vm366_vm1, %v347_v55  ;;  %1458 = vmatprep.subr.bf16.mxu0 %v1582_v7 }
  0x4e   : > { %1459 = vmatpush3.bf16.msra.mxu0 %v1583_v8 }
  0x4f   : > { %1460 = vmatprep.subr.bf16.mxu0 %v1584_v9 }
  0x52   : > { %1461 = vmatpush3.bf16.msra.mxu0 %v1585_v10 }
  0xe6   : > { %v432_v18 = vpop.f32.mrb[0].mxu0 }
  0xe7   : > { %v433_v19 = vadd.f32 %v432_v18, %v1841_v16  ;;  %v434_v20 = vpop.f32.mrb[1].mxu0 }
  0xe8   : > { %v435_v21 = vadd.f32 %v434_v20, %v1845_v17  ;;  %v436_v22 = vpop.f32.mrb[2].mxu0 }
  0xe9   : > { %v437_v23 = vadd.f32 %v436_v22, %v1841_v16  ;;  %v438_v24 = vpop.f32.mrb[3].mxu0  ;;  %v511_v26 = vmax.f32 %v433_v19, 0.0 }
  0xea   : > { %v439_v25 = vadd.f32 %v438_v24, %v1845_v17  ;;  %v512_v28 = vmax.f32 %v435_v21, 0.0 }
  0xeb   : > { %v513_v27 = vmax.f32 %v437_v23, 0.0 }
  0xec   : > { %v514_v29 = vmax.f32 %v439_v25, 0.0 }
  0xed   : > { %v543_v30 = vpack.c.bf16 %v513_v27, %v511_v26 }
  0xee   : > { %v442_v31 = vpop.f32.mrb[4].mxu0  ;;  %v544_v32 = vpack.c.bf16 %v514_v29, %v512_v28 }
  0xef   : > { %v443_v33 = vadd.f32 %v442_v31, %v1841_v16  ;;  %v444_v34 = vpop.f32.mrb[5].mxu0 }
  0xf0   : > { %v445_v35 = vadd.f32 %v444_v34, %v1845_v17  ;;  %v446_v36 = vpop.f32.mrb[6].mxu0  ;;  %795 = vmatprep.mubr.bf16.mxu1 %v544_v32 }
  0xf1   : > { %v447_v37 = vadd.f32 %v446_v36, %v1841_v16  ;;  %v448_v38 = vpop.f32.mrb[7].mxu0  ;;  %796 = vmatmul.mubr.bf16.vlgmr.msra.gmra.mrb[0].mxu1 %v543_v30  ;;  %v515_v40 = vmax.f32 %v443_v33, 0.0 }
  0xf2   : > { %v449_v39 = vadd.f32 %v448_v38, %v1845_v17  ;;  %v516_v42 = vmax.f32 %v445_v35, 0.0 }
  0xf3   : > { %v517_v41 = vmax.f32 %v447_v37, 0.0 }
  0xf4   : > { %v518_v43 = vmax.f32 %v449_v39, 0.0 }
  0xf5   : > { %v545_v44 = vpack.c.bf16 %v517_v41, %v515_v40 }
  0xf6   : > { %v546_v45 = vpack.c.bf16 %v518_v43, %v516_v42  ;;  %v452_v46 = vpop.f32.mrb[8].mxu0 }
  0xf7   : > { %v453_v47 = vadd.f32 %v452_v46, %v1841_v16  ;;  %v454_v48 = vpop.f32.mrb[9].mxu0 }
  0xf8   : > { %v455_v49 = vadd.f32 %v454_v48, %v1845_v17  ;;  %v456_v50 = vpop.f32.mrb[10].mxu0  ;;  %805 = vmatprep.mubr.bf16.mxu1 %v546_v45 }
  0xf9   : > { %v457_v51 = vadd.f32 %v456_v50, %v1841_v16  ;;  %v458_v52 = vpop.f32.mrb[11].mxu0  ;;  %806 = vmatmul.mubr.bf16.gmra.mrb[4].mxu1 %v545_v44  ;;  %v519_v54 = vmax.f32 %v453_v47, 0.0 }
  0xfa   : > { %v459_v53 = vadd.f32 %v458_v52, %v1845_v17  ;;  %v520_v56 = vmax.f32 %v455_v49, 0.0 }
  0xfb   : > { %v521_v55 = vmax.f32 %v457_v51, 0.0 }
  0xfc   : > { %v522_v57 = vmax.f32 %v459_v53, 0.0 }
  0xfd   : > { %v547_v58 = vpack.c.bf16 %v521_v55, %v519_v54 }
  0xfe   : > { %v548_v59 = vpack.c.bf16 %v522_v57, %v520_v56  ;;  %v462_v60 = vpop.f32.mrb[12].mxu0 }
  0xff   : > { %v463_v61 = vadd.f32 %v462_v60, %v1841_v16  ;;  %v464_v62 = vpop.f32.mrb[13].mxu0 }
 0x100   : > { %v465_v63 = vadd.f32 %v464_v62, %v1845_v17  ;;  %v466_v0 = vpop.f32.mrb[14].mxu0  ;;  %815 = vmatprep.mubr.bf16.mxu1 %v548_v59 }
 0x101   : > { %v467_v1 = vadd.f32 %v466_v0, %v1841_v16  ;;  %v468_v2 = vpop.f32.mrb[15].mxu0  ;;  %816 = vmatmul.mubr.bf16.gmra.mrb[8].mxu1 %v547_v58  ;;  %v523_v4 = vmax.f32 %v463_v61, 0.0 }
 0x102   : > { %v469_v3 = vadd.f32 %v468_v2, %v1845_v17  ;;  %v524_v6 = vmax.f32 %v465_v63, 0.0 }
 0x103   : > { %v525_v5 = vmax.f32 %v467_v1, 0.0 }
 0x104   : > { %v526_v7 = vmax.f32 %v469_v3, 0.0 }
 0x105   : > { %v549_v8 = vpack.c.bf16 %v525_v5, %v523_v4 }
 0x106   : > { %v550_v9 = vpack.c.bf16 %v526_v7, %v524_v6  ;;  %v472_v10 = vpop.f32.mrb[16].mxu0  ;;  %v1586_v7 = vld [vmem:[%s2049_s5 + $0x78] sm:$0xff]  }
 0x107   : > { %v473_v11 = vadd.f32 %v472_v10, %v1841_v16  ;;  %v474_v14 = vpop.f32.mrb[17].mxu0  ;;  %1462 = vmatprep.subr.bf16.mxu0 %v1586_v7 }
 0x108   : > { %v475_v18 = vadd.f32 %v474_v14, %v1845_v17  ;;  %v476_v19 = vpop.f32.mrb[18].mxu0  ;;  %825 = vmatprep.mubr.bf16.mxu1 %v550_v9 }
 0x109   : > { %v477_v20 = vadd.f32 %v476_v19, %v1841_v16  ;;  %v478_v21 = vpop.f32.mrb[19].mxu0  ;;  %826 = vmatmul.mubr.bf16.gmra.mrb[12].mxu1 %v549_v8  ;;  %v527_v23 = vmax.f32 %v473_v11, 0.0 }
 0x10a   : > { %v479_v22 = vadd.f32 %v478_v21, %v1845_v17  ;;  %v528_v25 = vmax.f32 %v475_v18, 0.0 }
 0x10b   : > { %v529_v24 = vmax.f32 %v477_v20, 0.0 }
 0x10c   : > { %v530_v26 = vmax.f32 %v479_v22, 0.0 }
 0x10d   : > { %v551_v27 = vpack.c.bf16 %v529_v24, %v527_v23 }
 0x10e   : > { %v552_v28 = vpack.c.bf16 %v530_v26, %v528_v25  ;;  %v482_v29 = vpop.f32.mrb[20].mxu0 }
 0x10f   : > { %v483_v30 = vadd.f32 %v482_v29, %v1841_v16  ;;  %v484_v31 = vpop.f32.mrb[21].mxu0 }
 0x110   : > { %v485_v32 = vadd.f32 %v484_v31, %v1845_v17  ;;  %v486_v33 = vpop.f32.mrb[22].mxu0  ;;  %835 = vmatprep.mubr.bf16.mxu1 %v552_v28 }
 0x111   : > { %v487_v34 = vadd.f32 %v486_v33, %v1841_v16  ;;  %v488_v35 = vpop.f32.mrb[23].mxu0  ;;  %836 = vmatmul.mubr.bf16.gmra.mrb[16].mxu1 %v551_v27  ;;  %v531_v37 = vmax.f32 %v483_v30, 0.0 }
 0x112   : > { %v489_v36 = vadd.f32 %v488_v35, %v1845_v17  ;;  %v532_v39 = vmax.f32 %v485_v32, 0.0 }
 0x113   : > { %v533_v38 = vmax.f32 %v487_v34, 0.0 }
 0x114   : > { %v534_v40 = vmax.f32 %v489_v36, 0.0 }
 0x115   : > { %v553_v41 = vpack.c.bf16 %v533_v38, %v531_v37 }
 0x116   : > { %v554_v42 = vpack.c.bf16 %v534_v40, %v532_v39  ;;  %v492_v43 = vpop.f32.mrb[24].mxu0 }
 0x117   : > { %v493_v44 = vadd.f32 %v492_v43, %v1841_v16  ;;  %v494_v45 = vpop.f32.mrb[25].mxu0 }
 0x118   : > { %v495_v46 = vadd.f32 %v494_v45, %v1845_v17  ;;  %v496_v47 = vpop.f32.mrb[26].mxu0  ;;  %845 = vmatprep.mubr.bf16.mxu1 %v554_v42 }
 0x119   : > { %v497_v48 = vadd.f32 %v496_v47, %v1841_v16  ;;  %v498_v49 = vpop.f32.mrb[27].mxu0  ;;  %846 = vmatmul.mubr.bf16.gmra.mrb[20].mxu1 %v553_v41  ;;  %v535_v51 = vmax.f32 %v493_v44, 0.0 }
 0x11a   : > { %v499_v50 = vadd.f32 %v498_v49, %v1845_v17  ;;  %v536_v53 = vmax.f32 %v495_v46, 0.0 }
 0x11b   : > { %v537_v52 = vmax.f32 %v497_v48, 0.0 }
 0x11c   : > { %v538_v54 = vmax.f32 %v499_v50, 0.0 }
 0x11d   : > { %v555_v55 = vpack.c.bf16 %v537_v52, %v535_v51 }
 0x11e   : > { %v556_v56 = vpack.c.bf16 %v538_v54, %v536_v53  ;;  %v502_v57 = vpop.f32.mrb[28].mxu0 }
 0x11f   : > { %v503_v58 = vadd.f32 %v502_v57, %v1841_v16  ;;  %v504_v59 = vpop.f32.mrb[29].mxu0 }
 0x120   : > { %v505_v60 = vadd.f32 %v504_v59, %v1845_v17  ;;  %v506_v61 = vpop.f32.mrb[30].mxu0  ;;  %855 = vmatprep.mubr.bf16.mxu1 %v556_v56 }
 0x121   : > { %v507_v62 = vadd.f32 %v506_v61, %v1841_v16  ;;  %v508_v63 = vpop.f32.mrb[31].mxu0  ;;  %856 = vmatmul.mubr.bf16.gmra.mrb[24].mxu1 %v555_v55  ;;  %v539_v1 = vmax.f32 %v503_v58, 0.0  ;;  %v1587_v16 = vld [vmem:[%s2049_s5 + $0x38] sm:$0xff]  }
 0x122   : > { %v509_v0 = vadd.f32 %v508_v63, %v1845_v17  ;;  %v540_v3 = vmax.f32 %v505_v60, 0.0  ;;  %1463 = vmatpush3.bf16.msra.mxu0 %v1587_v16  ;;  %v591_v17 = vld [vmem:[%s2048_s4] sm:$0x3] }
 0x123   : > { %v541_v2 = vmax.f32 %v507_v62, 0.0  ;;  %v1890_v8 = vrot.slane %v591_v17, %v353_v13  ;;  %v1894_v9 = vrot.slane %v591_v17, %v357_v15 }
 0x124   : > { %v542_v4 = vmax.f32 %v509_v0, 0.0 }
 0x125   : > { %v557_v5 = vpack.c.bf16 %v541_v2, %v539_v1 }
 0x126   : > { %v558_v6 = vpack.c.bf16 %v542_v4, %v540_v3 }
 0x128   : > { %865 = vmatprep.mubr.bf16.mxu1 %v558_v6 }
 0x129   : > { %866 = vmatmul.mubr.bf16.gmra.mrb[28].mxu1 %v557_v5 }
 0x1c4   : > { %v797_v10 = vpop.f32.mrb[0].mxu1 }
 0x1c5   : > { %v798_v11 = vadd.f32 %v797_v10, %v1890_v8  ;;  %v799_v14 = vpop.f32.mrb[1].mxu1 }
 0x1c6   : > { %v800_v18 = vadd.f32 %v799_v14, %v1894_v9  ;;  %v801_v19 = vpop.f32.mrb[2].mxu1 }
 0x1c7   : > { %v802_v20 = vadd.f32 %v801_v19, %v1890_v8  ;;  %v803_v21 = vpop.f32.mrb[3].mxu1  ;;  %v876_v23 = vmax.f32 %v798_v11, 0.0 }
 0x1c8   : > { %v804_v22 = vadd.f32 %v803_v21, %v1894_v9  ;;  %v877_v13 = vmax.f32 %v800_v18, 0.0 }
 0x1c9   : > { %v878_v24 = vmax.f32 %v802_v20, 0.0 }
 0x1ca   : > { %v879_v25 = vmax.f32 %v804_v22, 0.0 }
 0x1cb   : > { %v908_v26 = vpack.c.bf16 %v878_v24, %v876_v23 }
 0x1cc   : > { %v909_v12 = vpack.c.bf16 %v879_v25, %v877_v13  ;;  %v807_v15 = vpop.f32.mrb[4].mxu1 }
 0x1cd   : > { %v808_v27 = vadd.f32 %v807_v15, %v1890_v8  ;;  %v809_v28 = vpop.f32.mrb[5].mxu1 }
 0x1ce   : > { %v810_v29 = vadd.f32 %v809_v28, %v1894_v9  ;;  %v811_v30 = vpop.f32.mrb[6].mxu1  ;;  %1091 = vmatprep.mubr.bf16.mxu0 %v909_v12 }
 0x1cf   : > { %v812_v31 = vadd.f32 %v811_v30, %v1890_v8  ;;  %v813_v32 = vpop.f32.mrb[7].mxu1  ;;  %1092 = vmatmul.mubr.bf16.vlgmr.msra.gmra.mrb[32].mxu0 %v908_v26  ;;  %v880_v34 = vmax.f32 %v808_v27, 0.0 }
 0x1d0   : > { %v814_v33 = vadd.f32 %v813_v32, %v1894_v9  ;;  %v881_v36 = vmax.f32 %v810_v29, 0.0 }
 0x1d1   : > { %v882_v35 = vmax.f32 %v812_v31, 0.0 }
 0x1d2   : > { %v883_v37 = vmax.f32 %v814_v33, 0.0 }
 0x1d3   : > { %v910_v38 = vpack.c.bf16 %v882_v35, %v880_v34 }
 0x1d4   : > { %v911_v39 = vpack.c.bf16 %v883_v37, %v881_v36  ;;  %v817_v40 = vpop.f32.mrb[8].mxu1 }
 0x1d5   : > { %v818_v41 = vadd.f32 %v817_v40, %v1890_v8  ;;  %v819_v42 = vpop.f32.mrb[9].mxu1 }
 0x1d6   : > { %v820_v43 = vadd.f32 %v819_v42, %v1894_v9  ;;  %v821_v44 = vpop.f32.mrb[10].mxu1  ;;  %1099 = vmatprep.mubr.bf16.mxu0 %v911_v39 }
 0x1d7   : > { %v822_v45 = vadd.f32 %v821_v44, %v1890_v8  ;;  %v823_v46 = vpop.f32.mrb[11].mxu1  ;;  %1100 = vmatmul.mubr.bf16.gmra.mrb[36].mxu0 %v910_v38  ;;  %v884_v48 = vmax.f32 %v818_v41, 0.0 }
 0x1d8   : > { %v824_v47 = vadd.f32 %v823_v46, %v1894_v9  ;;  %v885_v50 = vmax.f32 %v820_v43, 0.0 }
 0x1d9   : > { %v886_v49 = vmax.f32 %v822_v45, 0.0 }
 0x1da   : > { %v887_v51 = vmax.f32 %v824_v47, 0.0 }
 0x1db   : > { %v912_v52 = vpack.c.bf16 %v886_v49, %v884_v48 }
 0x1dc   : > { %v913_v53 = vpack.c.bf16 %v887_v51, %v885_v50  ;;  %v827_v54 = vpop.f32.mrb[12].mxu1 }
 0x1dd   : > { %v828_v55 = vadd.f32 %v827_v54, %v1890_v8  ;;  %v829_v56 = vpop.f32.mrb[13].mxu1 }
 0x1de   : > { %v830_v57 = vadd.f32 %v829_v56, %v1894_v9  ;;  %v831_v58 = vpop.f32.mrb[14].mxu1  ;;  %1107 = vmatprep.mubr.bf16.mxu0 %v913_v53 }
 0x1df   : > { %v832_v59 = vadd.f32 %v831_v58, %v1890_v8  ;;  %v833_v60 = vpop.f32.mrb[15].mxu1  ;;  %1108 = vmatmul.mubr.bf16.gmra.mrb[40].mxu0 %v912_v52  ;;  %v888_v62 = vmax.f32 %v828_v55, 0.0 }
 0x1e0   : > { %v834_v61 = vadd.f32 %v833_v60, %v1894_v9  ;;  %v889_v0 = vmax.f32 %v830_v57, 0.0 }
 0x1e1   : > { %v890_v63 = vmax.f32 %v832_v59, 0.0 }
 0x1e2   : > { %v891_v1 = vmax.f32 %v834_v61, 0.0 }
 0x1e3   : > { %v914_v2 = vpack.c.bf16 %v890_v63, %v888_v62  ;;  %v1931_v63 = vld [vmem:[%s2050_s6] ss:$0 sm:$0xff] }
 0x1e4   : > { %v915_v3 = vpack.c.bf16 %v891_v1, %v889_v0  ;;  %v837_v4 = vpop.f32.mrb[16].mxu1 }
 0x1e5   : > { %v838_v5 = vadd.f32 %v837_v4, %v1890_v8  ;;  %v839_v6 = vpop.f32.mrb[17].mxu1 }
 0x1e6   : > { %v840_v7 = vadd.f32 %v839_v6, %v1894_v9  ;;  %v841_v16 = vpop.f32.mrb[18].mxu1  ;;  %1115 = vmatprep.mubr.bf16.mxu0 %v915_v3 }
 0x1e7   : > { %v842_v17 = vadd.f32 %v841_v16, %v1890_v8  ;;  %v843_v10 = vpop.f32.mrb[19].mxu1  ;;  %1116 = vmatmul.mubr.bf16.gmra.mrb[44].mxu0 %v914_v2  ;;  %v892_v14 = vmax.f32 %v838_v5, 0.0 }
 0x1e8   : > { %v844_v11 = vadd.f32 %v843_v10, %v1894_v9  ;;  %v893_v19 = vmax.f32 %v840_v7, 0.0 }
 0x1e9   : > { %v894_v18 = vmax.f32 %v842_v17, 0.0 }
 0x1ea   : > { %v895_v20 = vmax.f32 %v844_v11, 0.0 }
 0x1eb   : > { %v916_v21 = vpack.c.bf16 %v894_v18, %v892_v14 }
 0x1ec   : > { %v917_v22 = vpack.c.bf16 %v895_v20, %v893_v19  ;;  %v847_v23 = vpop.f32.mrb[20].mxu1 }
 0x1ed   : > { %v848_v24 = vadd.f32 %v847_v23, %v1890_v8  ;;  %v849_v13 = vpop.f32.mrb[21].mxu1 }
 0x1ee   : > { %v850_v25 = vadd.f32 %v849_v13, %v1894_v9  ;;  %v851_v26 = vpop.f32.mrb[22].mxu1  ;;  %1123 = vmatprep.mubr.bf16.mxu0 %v917_v22 }
 0x1ef   : > { %v852_v12 = vadd.f32 %v851_v26, %v1890_v8  ;;  %v853_v15 = vpop.f32.mrb[23].mxu1  ;;  %1124 = vmatmul.mubr.bf16.gmra.mrb[48].mxu0 %v916_v21  ;;  %v896_v28 = vmax.f32 %v848_v24, 0.0 }
 0x1f0   : > { %v854_v27 = vadd.f32 %v853_v15, %v1894_v9  ;;  %v897_v30 = vmax.f32 %v850_v25, 0.0 }
 0x1f1   : > { %v898_v29 = vmax.f32 %v852_v12, 0.0 }
 0x1f2   : > { %v899_v31 = vmax.f32 %v854_v27, 0.0 }
 0x1f3   : > { %v918_v32 = vpack.c.bf16 %v898_v29, %v896_v28 }
 0x1f4   : > { %v919_v33 = vpack.c.bf16 %v899_v31, %v897_v30  ;;  %v857_v34 = vpop.f32.mrb[24].mxu1 }
 0x1f5   : > { %v858_v35 = vadd.f32 %v857_v34, %v1890_v8  ;;  %v859_v36 = vpop.f32.mrb[25].mxu1 }
 0x1f6   : > { %v860_v37 = vadd.f32 %v859_v36, %v1894_v9  ;;  %v861_v38 = vpop.f32.mrb[26].mxu1  ;;  %1131 = vmatprep.mubr.bf16.mxu0 %v919_v33 }
 0x1f7   : > { %v862_v39 = vadd.f32 %v861_v38, %v1890_v8  ;;  %v863_v40 = vpop.f32.mrb[27].mxu1  ;;  %1132 = vmatmul.mubr.bf16.gmra.mrb[52].mxu0 %v918_v32  ;;  %v900_v42 = vmax.f32 %v858_v35, 0.0 }
 0x1f8   : > { %v864_v41 = vadd.f32 %v863_v40, %v1894_v9  ;;  %v901_v44 = vmax.f32 %v860_v37, 0.0 }
 0x1f9   : > { %v902_v43 = vmax.f32 %v862_v39, 0.0 }
 0x1fa   : > { %v903_v45 = vmax.f32 %v864_v41, 0.0 }
 0x1fb   : > { %v920_v46 = vpack.c.bf16 %v902_v43, %v900_v42 }
 0x1fc   : > { %v921_v47 = vpack.c.bf16 %v903_v45, %v901_v44  ;;  %v867_v48 = vpop.f32.mrb[28].mxu1 }
 0x1fd   : > { %v868_v49 = vadd.f32 %v867_v48, %v1890_v8  ;;  %v869_v50 = vpop.f32.mrb[29].mxu1 }
 0x1fe   : > { %v870_v51 = vadd.f32 %v869_v50, %v1894_v9  ;;  %v871_v52 = vpop.f32.mrb[30].mxu1  ;;  %1139 = vmatprep.mubr.bf16.mxu0 %v921_v47 }
 0x1ff   : > { %v872_v53 = vadd.f32 %v871_v52, %v1890_v8  ;;  %v873_v54 = vpop.f32.mrb[31].mxu1  ;;  %1140 = vmatmul.mubr.bf16.gmra.mrb[56].mxu0 %v920_v46  ;;  %v904_v56 = vmax.f32 %v868_v49, 0.0 }
 0x200   : > { %v874_v55 = vadd.f32 %v873_v54, %v1894_v9  ;;  %v905_v58 = vmax.f32 %v870_v51, 0.0 }
 0x201   : > { %v906_v57 = vmax.f32 %v872_v53, 0.0 }
 0x202   : > { %v907_v59 = vmax.f32 %v874_v55, 0.0 }
 0x203   : > { %v922_v60 = vpack.c.bf16 %v906_v57, %v904_v56 }
 0x204   : > { %v923_v61 = vpack.c.bf16 %v907_v59, %v905_v58 }
 0x206   : > { %1147 = vmatprep.mubr.bf16.mxu0 %v923_v61 }
 0x207   : > { %1148 = vmatmul.mubr.bf16.gmra.mrb[60].mxu0 %v922_v60 }
 0x2a2   : > { %v1464_v62 = vpop.f32.mrb[32].mxu0 }
 0x2a3   : > { %v1465_v8 = vpop.f32.mrb[33].mxu0 }
 0x2a4   : > { %v1466_v0 = vadd.f32 %v1465_v8, %v1464_v62  ;;  %v1467_v1 = vpop.f32.mrb[34].mxu0 }
 0x2a5   : > { %v1468_v9 = vpop.f32.mrb[35].mxu0 }
 0x2a6   : > { %v1094_v2 = vadd.f32 %v1466_v0, %v1931_v63  ;;  %v1469_v3 = vadd.f32 %v1468_v9, %v1467_v1 }
 0x2a8   : > { %1157 = vst.msk [vmem:[%s1937_s19] sm:$0xff] %vm1156_vm2, %v1094_v2  ;;  %v1097_v4 = vadd.f32 %v1469_v3, %v1931_v63  ;;  %v1173_v5 = vmax.f32 %v1094_v2, 1e-06 }
 0x2aa   : > { %1158 = vst.msk [vmem:[%s1937_s19 + $0x8] sm:$0xff] %vm1156_vm2, %v1097_v4  ;;  %v1470_v6 = vpop.f32.mrb[36].mxu0  ;;  %v1189_v7 = vmin.f32 %v1173_v5, 1.0  ;;  %v1174_v16 = vmax.f32 %v1097_v4, 1e-06 }
 0x2ab   : > { %v1471_v17 = vpop.f32.mrb[37].mxu0 }
 0x2ac   : > { %v1472_v10 = vadd.f32 %v1471_v17, %v1470_v6  ;;  %v1473_v11 = vpop.f32.mrb[38].mxu0  ;;  %1221 = vrot.lane.b32.xlu0 %v1189_v7, %s1597_s20  ;;  %v1190_v20 = vmin.f32 %v1174_v16, 1.0 }
 0x2ad   : > { %v1474_v14 = vpop.f32.mrb[39].mxu0 }
 0x2ae   : > { %v1102_v18 = vadd.f32 %v1472_v10, %v1931_v63  ;;  %v1475_v19 = vadd.f32 %v1474_v14, %v1473_v11 }
 0x2b0   : > { %1159 = vst.msk [vmem:[%s1937_s19 + $0x10] sm:$0xff] %vm1156_vm2, %v1102_v18  ;;  %v1105_v21 = vadd.f32 %v1475_v19, %v1931_v63  ;;  %1223 = vrot.lane.b32.xlu0 %v1190_v20, %s1597_s20  ;;  %v1175_v22 = vmax.f32 %v1102_v18, 1e-06 }
 0x2b2   : > { %1160 = vst.msk [vmem:[%s1937_s19 + $0x18] sm:$0xff] %vm1156_vm2, %v1105_v21  ;;  %v1476_v23 = vpop.f32.mrb[40].mxu0  ;;  %v1191_v24 = vmin.f32 %v1175_v22, 1.0  ;;  %v1176_v13 = vmax.f32 %v1105_v21, 1e-06 }
 0x2b3   : > { %v1477_v25 = vpop.f32.mrb[41].mxu0 }
 0x2b4   : > { %v1478_v26 = vadd.f32 %v1477_v25, %v1476_v23  ;;  %v1479_v12 = vpop.f32.mrb[42].mxu0  ;;  %1225 = vrot.lane.b32.xlu1 %v1191_v24, %s1597_s20  ;;  %v1192_v29 = vmin.f32 %v1176_v13, 1.0 }
 0x2b5   : > { %v1480_v15 = vpop.f32.mrb[43].mxu0 }
 0x2b6   : > { %v1110_v27 = vadd.f32 %v1478_v26, %v1931_v63  ;;  %v1481_v28 = vadd.f32 %v1480_v15, %v1479_v12 }
 0x2b8   : > { %1161 = vst.msk [vmem:[%s1937_s19 + $0x20] sm:$0xff] %vm1156_vm2, %v1110_v27  ;;  %v1113_v30 = vadd.f32 %v1481_v28, %v1931_v63  ;;  %1227 = vrot.lane.b32.xlu1 %v1192_v29, %s1597_s20  ;;  %v1177_v31 = vmax.f32 %v1110_v27, 1e-06 }
 0x2ba   : > { %1162 = vst.msk [vmem:[%s1937_s19 + $0x28] sm:$0xff] %vm1156_vm2, %v1113_v30  ;;  %v1482_v32 = vpop.f32.mrb[44].mxu0  ;;  %v1193_v33 = vmin.f32 %v1177_v31, 1.0  ;;  %v1178_v34 = vmax.f32 %v1113_v30, 1e-06 }
 0x2bb   : > { %v1483_v35 = vpop.f32.mrb[45].mxu0 }
 0x2bc   : > { %v1484_v36 = vadd.f32 %v1483_v35, %v1482_v32  ;;  %v1485_v37 = vpop.f32.mrb[46].mxu0  ;;  %1229 = vrot.lane.b32.xlu0 %v1193_v33, %s1597_s20  ;;  %v1194_v38 = vmin.f32 %v1178_v34, 1.0 }
 0x2bd   : > { %v1486_v39 = vpop.f32.mrb[47].mxu0 }
 0x2be   : > { %v1118_v40 = vadd.f32 %v1484_v36, %v1931_v63  ;;  %v1487_v41 = vadd.f32 %v1486_v39, %v1485_v37  ;;  %1231 = vrot.lane.b32.xlu1 %v1194_v38, %s1597_s20 }
 0x2c0   : > { %1163 = vst.msk [vmem:[%s1937_s19 + $0x30] sm:$0xff] %vm1156_vm2, %v1118_v40  ;;  %v1121_v42 = vadd.f32 %v1487_v41, %v1931_v63  ;;  %v1179_v43 = vmax.f32 %v1118_v40, 1e-06 }
 0x2c2   : > { %1164 = vst.msk [vmem:[%s1937_s19 + $0x38] sm:$0xff] %vm1156_vm2, %v1121_v42  ;;  %v1488_v44 = vpop.f32.mrb[48].mxu0  ;;  %v1195_v45 = vmin.f32 %v1179_v43, 1.0  ;;  %v1180_v46 = vmax.f32 %v1121_v42, 1e-06 }
 0x2c3   : > { %v1489_v47 = vpop.f32.mrb[49].mxu0 }
 0x2c4   : > { %v1490_v48 = vadd.f32 %v1489_v47, %v1488_v44  ;;  %v1491_v49 = vpop.f32.mrb[50].mxu0  ;;  %1233 = vrot.lane.b32.xlu0 %v1195_v45, %s1597_s20  ;;  %v1196_v50 = vmin.f32 %v1180_v46, 1.0 }
 0x2c5   : > { %v1492_v51 = vpop.f32.mrb[51].mxu0 }
 0x2c6   : > { %v1126_v52 = vadd.f32 %v1490_v48, %v1931_v63  ;;  %v1493_v53 = vadd.f32 %v1492_v51, %v1491_v49  ;;  %1235 = vrot.lane.b32.xlu1 %v1196_v50, %s1597_s20 }
 0x2c8   : > { %1165 = vst.msk [vmem:[%s1937_s19 + $0x40] sm:$0xff] %vm1156_vm2, %v1126_v52  ;;  %v1129_v54 = vadd.f32 %v1493_v53, %v1931_v63  ;;  %v1181_v55 = vmax.f32 %v1126_v52, 1e-06 }
 0x2ca   : > { %1166 = vst.msk [vmem:[%s1937_s19 + $0x48] sm:$0xff] %vm1156_vm2, %v1129_v54  ;;  %v1494_v56 = vpop.f32.mrb[52].mxu0  ;;  %v1197_v57 = vmin.f32 %v1181_v55, 1.0  ;;  %v1182_v58 = vmax.f32 %v1129_v54, 1e-06 }
 0x2cb   : > { %v1495_v59 = vpop.f32.mrb[53].mxu0 }
 0x2cc   : > { %v1496_v60 = vadd.f32 %v1495_v59, %v1494_v56  ;;  %v1497_v61 = vpop.f32.mrb[54].mxu0  ;;  %1237 = vrot.lane.b32.xlu0 %v1197_v57, %s1597_s20  ;;  %v1198_v62 = vmin.f32 %v1182_v58, 1.0 }
 0x2cd   : > { %v1498_v8 = vpop.f32.mrb[55].mxu0 }
 0x2ce   : > { %v1134_v0 = vadd.f32 %v1496_v60, %v1931_v63  ;;  %v1499_v1 = vadd.f32 %v1498_v8, %v1497_v61  ;;  %1239 = vrot.lane.b32.xlu1 %v1198_v62, %s1597_s20 }
 0x2d0   : > { %1167 = vst.msk [vmem:[%s1937_s19 + $0x50] sm:$0xff] %vm1156_vm2, %v1134_v0  ;;  %v1137_v9 = vadd.f32 %v1499_v1, %v1931_v63  ;;  %v1183_v2 = vmax.f32 %v1134_v0, 1e-06 }
 0x2d2   : > { %1168 = vst.msk [vmem:[%s1937_s19 + $0x58] sm:$0xff] %vm1156_vm2, %v1137_v9  ;;  %v1500_v3 = vpop.f32.mrb[56].mxu0  ;;  %v1199_v4 = vmin.f32 %v1183_v2, 1.0  ;;  %v1184_v5 = vmax.f32 %v1137_v9, 1e-06 }
 0x2d3   : > { %v1501_v6 = vpop.f32.mrb[57].mxu0 }
 0x2d4   : > { %v1502_v7 = vadd.f32 %v1501_v6, %v1500_v3  ;;  %v1503_v16 = vpop.f32.mrb[58].mxu0  ;;  %1241 = vrot.lane.b32.xlu0 %v1199_v4, %s1597_s20  ;;  %v1200_v17 = vmin.f32 %v1184_v5, 1.0 }
 0x2d5   : > { %v1504_v10 = vpop.f32.mrb[59].mxu0 }
 0x2d6   : > { %v1142_v11 = vadd.f32 %v1502_v7, %v1931_v63  ;;  %v1505_v14 = vadd.f32 %v1504_v10, %v1503_v16  ;;  %1243 = vrot.lane.b32.xlu1 %v1200_v17, %s1597_s20 }
 0x2d8   : > { %1169 = vst.msk [vmem:[%s1937_s19 + $0x60] sm:$0xff] %vm1156_vm2, %v1142_v11  ;;  %v1145_v18 = vadd.f32 %v1505_v14, %v1931_v63  ;;  %v1185_v19 = vmax.f32 %v1142_v11, 1e-06 }
 0x2da   : > { %1170 = vst.msk [vmem:[%s1937_s19 + $0x68] sm:$0xff] %vm1156_vm2, %v1145_v18  ;;  %v1506_v20 = vpop.f32.mrb[60].mxu0  ;;  %v1201_v21 = vmin.f32 %v1185_v19, 1.0  ;;  %v1186_v22 = vmax.f32 %v1145_v18, 1e-06 }
 0x2db   : > { %v1507_v23 = vpop.f32.mrb[61].mxu0 }
 0x2dc   : > { %v1508_v24 = vadd.f32 %v1507_v23, %v1506_v20  ;;  %v1509_v13 = vpop.f32.mrb[62].mxu0  ;;  %1245 = vrot.lane.b32.xlu0 %v1201_v21, %s1597_s20  ;;  %v1202_v25 = vmin.f32 %v1186_v22, 1.0 }
 0x2dd   : > { %v1510_v26 = vpop.f32.mrb[63].mxu0 }
 0x2de   : > { %v1150_v12 = vadd.f32 %v1508_v24, %v1931_v63  ;;  %v1511_v15 = vadd.f32 %v1510_v26, %v1509_v13  ;;  %1247 = vrot.lane.b32.xlu1 %v1202_v25, %s1597_s20 }
 0x2e0   : > { %1171 = vst.msk [vmem:[%s1937_s19 + $0x70] sm:$0xff] %vm1156_vm2, %v1150_v12  ;;  %v1153_v27 = vadd.f32 %v1511_v15, %v1931_v63  ;;  %v1187_v28 = vmax.f32 %v1150_v12, 1e-06 }
 0x2e2   : > { %1172 = vst.msk [vmem:[%s1937_s19 + $0x78] sm:$0xff] %vm1156_vm2, %v1153_v27  ;;  %v1203_v29 = vmin.f32 %v1187_v28, 1.0  ;;  %v1188_v30 = vmax.f32 %v1153_v27, 1e-06 }
 0x2e4   : > { %1249 = vrot.lane.b32.xlu0 %v1203_v29, %s1597_s20  ;;  %v1204_v31 = vmin.f32 %v1188_v30, 1.0 }
 0x2e6   : > { %1251 = vrot.lane.b32.xlu1 %v1204_v31, %s1597_s20 }
 0x31e   : > { %v1222_v63 = vpop.permute.xlu0 %1221 }
 0x31f   : > { %1269 = vst.msk [vmem:[%s2007_s24] sm:$0xff] %vm1156_vm2, %v1222_v63 }
 0x322   : > { %v1224_v32 = vpop.permute.xlu0 %1223 }
 0x323   : > { %1270 = vst.msk [vmem:[%s2007_s24 + $0x8] sm:$0xff] %vm1156_vm2, %v1224_v32 }
 0x326   : > { %v1226_v33 = vpop.permute.xlu1 %1225 }
 0x327   : > { %1271 = vst.msk [vmem:[%s2007_s24 + $0x10] sm:$0xff] %vm1156_vm2, %v1226_v33 }
 0x32a   : > { %v1228_v34 = vpop.permute.xlu1 %1227 }
 0x32b   : > { %1272 = vst.msk [vmem:[%s2007_s24 + $0x18] sm:$0xff] %vm1156_vm2, %v1228_v34 }
 0x32e   : > { %v1230_v35 = vpop.permute.xlu0 %1229 }
 0x32f   : > { %1273 = vst.msk [vmem:[%s2007_s24 + $0x20] sm:$0xff] %vm1156_vm2, %v1230_v35 }
 0x330   : > { %v1232_v36 = vpop.permute.xlu1 %1231 }
 0x331   : > { %1274 = vst.msk [vmem:[%s2007_s24 + $0x28] sm:$0xff] %vm1156_vm2, %v1232_v36 }
 0x336   : > { %v1234_v37 = vpop.permute.xlu0 %1233 }
 0x337   : > { %1275 = vst.msk [vmem:[%s2007_s24 + $0x30] sm:$0xff] %vm1156_vm2, %v1234_v37 }
 0x338   : > { %v1236_v38 = vpop.permute.xlu1 %1235 }
 0x339   : > { %1276 = vst.msk [vmem:[%s2007_s24 + $0x38] sm:$0xff] %vm1156_vm2, %v1236_v38 }
 0x33e   : > { %v1238_v39 = vpop.permute.xlu0 %1237 }
 0x33f   : > { %1277 = vst.msk [vmem:[%s2007_s24 + $0x40] sm:$0xff] %vm1156_vm2, %v1238_v39 }
 0x340   : > { %v1240_v40 = vpop.permute.xlu1 %1239 }
 0x341   : > { %1278 = vst.msk [vmem:[%s2007_s24 + $0x48] sm:$0xff] %vm1156_vm2, %v1240_v40 }
 0x346   : > { %v1242_v41 = vpop.permute.xlu0 %1241 }
 0x347   : > { %1279 = vst.msk [vmem:[%s2007_s24 + $0x50] sm:$0xff] %vm1156_vm2, %v1242_v41 }
 0x348   : > { %v1244_v42 = vpop.permute.xlu1 %1243 }
 0x349   : > { %1280 = vst.msk [vmem:[%s2007_s24 + $0x58] sm:$0xff] %vm1156_vm2, %v1244_v42 }
 0x34e   : > { %v1246_v43 = vpop.permute.xlu0 %1245 }
 0x34f   : > { %1281 = vst.msk [vmem:[%s2007_s24 + $0x60] sm:$0xff] %vm1156_vm2, %v1246_v43 }
 0x350   : > { %v1248_v44 = vpop.permute.xlu1 %1247 }
 0x351   : > { %1282 = vst.msk [vmem:[%s2007_s24 + $0x68] sm:$0xff] %vm1156_vm2, %v1248_v44 }
 0x356   : > { %v1250_v45 = vpop.permute.xlu0 %1249 }
 0x357   : > { %1283 = vst.msk [vmem:[%s2007_s24 + $0x70] sm:$0xff] %vm1156_vm2, %v1250_v45 }
 0x358   : > { %v1252_v46 = vpop.permute.xlu1 %1251 }
 0x359   : > { %1284 = vst.msk [vmem:[%s2007_s24 + $0x78] sm:$0xff] %vm1156_vm2, %v1252_v46 }
 0x35a PF: > { %s19_s27 = sadd.s32 1, %s1594_s27  }
 0x35b   : > { %p16_p4 = scmp.ge.s32.totalorder %s19_s27, 4  }
 0x35d   :  { %18 = sbr.rel (!%p16_p4) target bundleno = 1 (0x1), region = 90 }

</bundles_post_ra>
